<compile_context>
chip_gen: v6e
topology: v6e:2x2x1
jax: 0.10.0
libtpu: 0.0.40
codegen_flags: <defaults>
</compile_context>

<pallas_src>
import jax
import jax.numpy as jnp
from jax.experimental import pallas as pl
from jax.experimental.pallas import tpu as pltpu


def mlp_kernel(x_ref, w1_ref, b1_ref, w2_ref, b2_ref, w3_ref, b3_ref, o_ref):
    # Layer 1: Linear(input_dim -> dims[0]) + ReLU   (dropout p=0 -> identity)
    h = jnp.dot(x_ref[...], w1_ref[...], preferred_element_type=jnp.float32)
    h = jnp.maximum(h + b1_ref[...], 0.0)
    # Layer 2: Linear(dims[0] -> dims[1]) + ReLU
    h = jnp.dot(h, w2_ref[...], preferred_element_type=jnp.float32)
    h = jnp.maximum(h + b2_ref[...], 0.0)
    # Output layer: Linear(dims[1] -> 1).  N=1 would waste >99% of the MXU,
    # so do it as a VPU broadcast-multiply + XLU lane reduction instead.
    # w3_ref is the (1, dims[1]) weight row, b3_ref is (1, 1).
    o = jnp.sum(h * w3_ref[...], axis=-1, keepdims=True)
    o_ref[...] = o + b3_ref[...]


def mlp_forward(x, params, tm=512):
    """x: (B, input_dim) f32.  params: dict of kernel-layout weights/biases.

    Tiles the batch into TM-row blocks (TM>=512 when the batch allows it so
    each grid step amortizes the ~0.35us step overhead); weights stay resident
    in VMEM across steps.  Batch is zero-padded up to a multiple of TM and the
    padding is sliced off afterwards.
    """
    B, in_dim = x.shape
    d0 = params["w1t"].shape[1]
    d1 = params["w2t"].shape[1]

    # Batch tile: large for pipelining, multiple of 8 (sublane), never larger
    # than the (rounded-up) batch.  Per-step VMEM at TM=512 is well under 1 MiB
    # even double-buffered, so this also respects v7x's smaller 64 MiB VMEM.
    TM = min(tm, max(8, ((B + 7) // 8) * 8))
    B_pad = pl.cdiv(B, TM) * TM
    if B_pad != B:
        x = jnp.pad(x, ((0, B_pad - B), (0, 0)))

    grid = (B_pad // TM,)

    in_specs = [
        pl.BlockSpec((TM, in_dim), lambda i: (i, 0)),   # x tile (pipelined)
        pl.BlockSpec((in_dim, d0), lambda i: (0, 0)),   # w1 (resident)
        pl.BlockSpec((1, d0),      lambda i: (0, 0)),   # b1
        pl.BlockSpec((d0, d1),     lambda i: (0, 0)),   # w2
        pl.BlockSpec((1, d1),      lambda i: (0, 0)),   # b2
        pl.BlockSpec((1, d1),      lambda i: (0, 0)),   # w3 row
        pl.BlockSpec((1, 1),       lambda i: (0, 0)),   # b3
    ]
    out_spec = pl.BlockSpec((TM, 1), lambda i: (i, 0))

    flops = 2 * B_pad * (in_dim * d0 + d0 * d1 + d1)
    bytes_accessed = 4 * (B_pad * in_dim + B_pad           # x in, out
                          + in_dim * d0 + d0               # layer 1
                          + d0 * d1 + d1                   # layer 2
                          + d1 + 1)                        # output layer

    out = pl.pallas_call(
        mlp_kernel,
        out_shape=jax.ShapeDtypeStruct((B_pad, 1), jnp.float32),
        grid_spec=pltpu.PrefetchScalarGridSpec(
            num_scalar_prefetch=0,
            grid=grid,
            in_specs=in_specs,
            out_specs=out_spec),
        compiler_params=pltpu.CompilerParams(
            dimension_semantics=("parallel",)),   # v7x: 2 TCs split the batch
        cost_estimate=pl.CostEstimate(
            flops=flops, transcendentals=0, bytes_accessed=bytes_accessed),
    )(x,
      params["w1t"], params["b1"],
      params["w2t"], params["b2"],
      params["w3row"], params["b3"])

    return out[:B]


def init_params(key, input_dim, dims):
    """Deterministic init matching the nn.Linear shapes of
    MLP(input_dim, output_layer=True, dims=dims)."""
    keys = jax.random.split(key, 6)
    d0, d1 = dims

    # PyTorch Linear stores W as (out, in); the kernel wants (in, out) so the
    # hot path is a plain x @ W.  Biases kept as (1, out) rows.
    def lin(kw, kb, fan_in, fan_out):
        bound = 1.0 / jnp.sqrt(fan_in)
        w = jax.random.uniform(kw, (fan_in, fan_out), jnp.float32, -bound, bound)
        b = jax.random.uniform(kb, (1, fan_out), jnp.float32, -bound, bound)
        return w, b

    w1t, b1 = lin(keys[0], keys[1], input_dim, d0)
    w2t, b2 = lin(keys[2], keys[3], d0, d1)
    w3t, b3 = lin(keys[4], keys[5], d1, 1)
    # Output layer weight kept as a (1, d1) row for the VPU reduction path.
    return dict(w1t=w1t, b1=b1, w2t=w2t, b2=b2,
                w3row=w3t.T, b3=b3)


def mlp_reference(x, p):
    """Pure-JAX reference of the PyTorch forward (eval mode, p_drop=0)."""
    h = jnp.maximum(x @ p["w1t"] + p["b1"], 0.0)
    h = jnp.maximum(h @ p["w2t"] + p["b2"], 0.0)
    return jnp.sum(h * p["w3row"], axis=-1, keepdims=True) + p["b3"]


if __name__ == "__main__":
    key = jax.random.PRNGKey(0)
    kx, kp, kx2 = jax.random.split(key, 3)

    batch, input_dim = 8, 32
    dims = [64, 32]          # MLP(input_dim=32, output_layer=True, dims=[64, 32])

    params = init_params(kp, input_dim, dims)

    # Small-shape check (single grid step).
    x = jax.random.normal(kx, (batch, input_dim), jnp.float32)
    out = jax.block_until_ready(mlp_forward(x, params))
    ref = mlp_reference(x, params)
    assert out.shape == (batch, 1), out.shape
    assert jnp.allclose(out, ref, atol=1e-5, rtol=1e-5), "mismatch vs reference (small)"

    # Larger batch exercises the multi-step grid + batch padding path.
    big_batch = 1030
    x2 = jax.random.normal(kx2, (big_batch, input_dim), jnp.float32)
    out2 = jax.block_until_ready(mlp_forward(x2, params))
    ref2 = mlp_reference(x2, params)
    assert out2.shape == (big_batch, 1), out2.shape
    assert jnp.allclose(out2, ref2, atol=1e-5, rtol=1e-5), "mismatch vs reference (large)"

    print("KERNEL_OK")
</pallas_src>

<mosaic_0001>
module attributes {stable_mosaic.version = 11 : i64} {
  func.func @mlp_kernel(%arg0: i32, %arg1: memref<8x32xf32, #tpu.memory_space<vmem>>, %arg2: memref<32x64xf32, #tpu.memory_space<vmem>>, %arg3: memref<1x64xf32, #tpu.memory_space<vmem>>, %arg4: memref<64x32xf32, #tpu.memory_space<vmem>>, %arg5: memref<1x32xf32, #tpu.memory_space<vmem>>, %arg6: memref<1x32xf32, #tpu.memory_space<vmem>>, %arg7: memref<1x1xf32, #tpu.memory_space<vmem>>, %arg8: memref<8x1xf32, #tpu.memory_space<vmem>>) attributes {dimension_semantics = [#tpu.dimension_semantics<parallel>], iteration_bounds = array<i64: 1>, scalar_prefetch = 0 : i64, scratch_operands = 0 : i64, tpu.core_type = #tpu.core_type<tc>, window_params = [{transform_indices = @transform_0, window_bounds = array<i64: 8, 32>}, {pipeline_mode = #tpu.pipeline_mode<synchronous>, transform_indices = @transform_1, window_bounds = array<i64: 32, 64>}, {pipeline_mode = #tpu.pipeline_mode<synchronous>, transform_indices = @transform_2, window_bounds = array<i64: 1, 64>}, {pipeline_mode = #tpu.pipeline_mode<synchronous>, transform_indices = @transform_3, window_bounds = array<i64: 64, 32>}, {pipeline_mode = #tpu.pipeline_mode<synchronous>, transform_indices = @transform_4, window_bounds = array<i64: 1, 32>}, {pipeline_mode = #tpu.pipeline_mode<synchronous>, transform_indices = @transform_5, window_bounds = array<i64: 1, 32>}, {pipeline_mode = #tpu.pipeline_mode<synchronous>, transform_indices = @transform_6, window_bounds = array<i64: 1, 1>}, {transform_indices = @transform_7, window_bounds = array<i64: 8, 1>}]} {
    %c0 = arith.constant 0 : index
    %c0_0 = arith.constant 0 : index
    %0 = vector.load %arg1[%c0, %c0_0] : memref<8x32xf32, #tpu.memory_space<vmem>>, vector<8x32xf32>
    %c0_1 = arith.constant 0 : index
    %c0_2 = arith.constant 0 : index
    %1 = vector.load %arg2[%c0_1, %c0_2] : memref<32x64xf32, #tpu.memory_space<vmem>>, vector<32x64xf32>
    %cst = arith.constant dense<0.000000e+00> : vector<8x64xf32>
    %2 = tpu.matmul %0, %1, %cst {dimension_numbers = #tpu.dot_dimension_numbers<[1], [0], [0], [1], [0, 0, 1, 1], [], []>} : vector<8x32xf32>, vector<32x64xf32>, vector<8x64xf32> -> vector<8x64xf32>
    %c0_3 = arith.constant 0 : index
    %c0_4 = arith.constant 0 : index
    %3 = vector.load %arg3[%c0_3, %c0_4] : memref<1x64xf32, #tpu.memory_space<vmem>>, vector<1x64xf32>
    %4 = vector.broadcast %3 : vector<1x64xf32> to vector<8x64xf32>
    %5 = arith.addf %2, %4 : vector<8x64xf32>
    %cst_5 = arith.constant 0.000000e+00 : f32
    %6 = vector.broadcast %cst_5 : f32 to vector<8x64xf32>
    %7 = arith.maximumf %5, %6 : vector<8x64xf32>
    %c0_6 = arith.constant 0 : index
    %c0_7 = arith.constant 0 : index
    %8 = vector.load %arg4[%c0_6, %c0_7] : memref<64x32xf32, #tpu.memory_space<vmem>>, vector<64x32xf32>
    %cst_8 = arith.constant dense<0.000000e+00> : vector<8x32xf32>
    %9 = tpu.matmul %7, %8, %cst_8 {dimension_numbers = #tpu.dot_dimension_numbers<[1], [0], [0], [1], [0, 0, 1, 1], [], []>} : vector<8x64xf32>, vector<64x32xf32>, vector<8x32xf32> -> vector<8x32xf32>
    %c0_9 = arith.constant 0 : index
    %c0_10 = arith.constant 0 : index
    %10 = vector.load %arg5[%c0_9, %c0_10] : memref<1x32xf32, #tpu.memory_space<vmem>>, vector<1x32xf32>
    %11 = vector.broadcast %10 : vector<1x32xf32> to vector<8x32xf32>
    %12 = arith.addf %9, %11 : vector<8x32xf32>
    %cst_11 = arith.constant 0.000000e+00 : f32
    %13 = vector.broadcast %cst_11 : f32 to vector<8x32xf32>
    %14 = arith.maximumf %12, %13 : vector<8x32xf32>
    %c0_12 = arith.constant 0 : index
    %c0_13 = arith.constant 0 : index
    %15 = vector.load %arg6[%c0_12, %c0_13] : memref<1x32xf32, #tpu.memory_space<vmem>>, vector<1x32xf32>
    %16 = vector.broadcast %15 : vector<1x32xf32> to vector<8x32xf32>
    %17 = arith.mulf %14, %16 : vector<8x32xf32>
    %cst_14 = arith.constant dense<0.000000e+00> : vector<8xf32>
    %18 = vector.multi_reduction <add>, %17, %cst_14 [1] : vector<8x32xf32> to vector<8xf32>
    %19 = vector.shape_cast %18 : vector<8xf32> to vector<8x1xf32>
    %c0_15 = arith.constant 0 : index
    %c0_16 = arith.constant 0 : index
    %20 = vector.load %arg7[%c0_15, %c0_16] : memref<1x1xf32, #tpu.memory_space<vmem>>, vector<1x1xf32>
    %21 = vector.broadcast %20 : vector<1x1xf32> to vector<8x1xf32>
    %22 = arith.addf %19, %21 : vector<8x1xf32>
    %c0_17 = arith.constant 0 : index
    %c0_18 = arith.constant 0 : index
    %23 = vector.load %arg8[%c0_17, %c0_18] : memref<8x1xf32, #tpu.memory_space<vmem>>, vector<8x1xf32>
    tpu.vector_store %arg8[%c0_17, %c0_18], %22 {strides = array<i32>} : memref<8x1xf32, #tpu.memory_space<vmem>>, vector<8x1xf32>,
    return
  }
  func.func @transform_0(%arg0: i32) -> (i32, i32) {
    %c0_i32 = arith.constant 0 : i32
    %c0_i32_0 = arith.constant 0 : i32
    return %arg0, %c0_i32 : i32, i32
  }
  func.func @transform_1(%arg0: i32) -> (i32, i32) {
    %c0_i32 = arith.constant 0 : i32
    %c0_i32_0 = arith.constant 0 : i32
    %c0_i32_1 = arith.constant 0 : i32
    return %c0_i32, %c0_i32_0 : i32, i32
  }
  func.func @transform_2(%arg0: i32) -> (i32, i32) {
    %c0_i32 = arith.constant 0 : i32
    %c0_i32_0 = arith.constant 0 : i32
    %c0_i32_1 = arith.constant 0 : i32
    return %c0_i32, %c0_i32_0 : i32, i32
  }
  func.func @transform_3(%arg0: i32) -> (i32, i32) {
    %c0_i32 = arith.constant 0 : i32
    %c0_i32_0 = arith.constant 0 : i32
    %c0_i32_1 = arith.constant 0 : i32
    return %c0_i32, %c0_i32_0 : i32, i32
  }
  func.func @transform_4(%arg0: i32) -> (i32, i32) {
    %c0_i32 = arith.constant 0 : i32
    %c0_i32_0 = arith.constant 0 : i32
    %c0_i32_1 = arith.constant 0 : i32
    return %c0_i32, %c0_i32_0 : i32, i32
  }
  func.func @transform_5(%arg0: i32) -> (i32, i32) {
    %c0_i32 = arith.constant 0 : i32
    %c0_i32_0 = arith.constant 0 : i32
    %c0_i32_1 = arith.constant 0 : i32
    return %c0_i32, %c0_i32_0 : i32, i32
  }
  func.func @transform_6(%arg0: i32) -> (i32, i32) {
    %c0_i32 = arith.constant 0 : i32
    %c0_i32_0 = arith.constant 0 : i32
    %c0_i32_1 = arith.constant 0 : i32
    return %c0_i32, %c0_i32_0 : i32, i32
  }
  func.func @transform_7(%arg0: i32) -> (i32, i32) {
    %c0_i32 = arith.constant 0 : i32
    %c0_i32_0 = arith.constant 0 : i32
    return %arg0, %c0_i32 : i32, i32
  }
}

</mosaic_0001>

<bundles_post_ra>
// kernel: tpu_custom_call.1
= control target key start
LH: loop header
LB: loop body
LE: loop exit
PB: predicated region body
PF: predicated region fallthrough
CT: control target
= control target key end

     0   :  { %v282_v0 = vmov 0.0   ;;  %vm283_vm0 = vmmov 0   ;;  %vm40_vm1 = vcmask 261120   ;;  %vm130_vm2 = vcmask 523264   ;;  %s382_s1 = inlined_call_operand.vmem [shape: f32[32,64], index: 1, kind: input, shape index: {}]   ;;  %s383_s3 = inlined_call_operand.vmem [shape: f32[64,32], index: 3, kind: input, shape index: {}]   ;;  %s384_s0 = inlined_call_operand.vmem [shape: f32[8,32], index: 0, kind: input, shape index: {}]   ;;  %s385_s2 = inlined_call_operand.vmem [shape: f32[1,64], index: 2, kind: input, shape index: {}]   ;;  %s386_s6 = inlined_call_operand.<no memory space> [shape: f32[1,1], index: 6, kind: input, shape index: {}]   ;;  %s387_s4 = inlined_call_operand.vmem [shape: f32[1,32], index: 4, kind: input, shape index: {}]   ;;  %s388_s5 = inlined_call_operand.vmem [shape: f32[1,32], index: 5, kind: input, shape index: {}]   ;;  %s389_s7 = inlined_call_operand.vmem [shape: f32[8,1], index: 7, kind: output, shape index: {}]  }
   0x1   :  { %250 = vmatprep.subr.mxu0 %v282_v0  ;;  %v32_v1 = vld [vmem:[%s382_s1 + $0x18] sm:$0xff]  ;;  %v31_v2 = vld [vmem:[%s382_s1 + $0x10] sm:$0xff]  ;;  %258 = vmatprep.mubr.msk.f32.mxu0 %vm283_vm0, %v282_v0  ;;  %v30_v4 = vld [vmem:[%s382_s1 + $0x8] sm:$0xff]  ;;  %v12_v19 = vstv %s386_s6  ;;  %vm224_vm3 = vcmask 7168  }
   0x2   :  { %251 = vmatpush3.msra.mxu0 %v32_v1  ;;  %261 = vmatprep.subr.mxu1 %v282_v0  ;;  %v122_v3 = vld [vmem:[%s383_s3 + $0x38] sm:$0xff]  ;;  %v121_v5 = vld [vmem:[%s383_s3 + $0x30] sm:$0xff]  ;;  %v120_v6 = vld [vmem:[%s383_s3 + $0x28] sm:$0xff]  ;;  %13 = vst [vmem:[#allocation2] sm:$0x1] %v12_v19 }
   0x3   :  { %252 = vmatprep.subr.mxu0 %v282_v0  ;;  %262 = vmatpush3.msra.mxu1 %v122_v3  ;;  %v29_v7 = vld [vmem:[%s382_s1] sm:$0xff]  ;;  %v118_v10 = vld [vmem:[%s383_s3 + $0x18] sm:$0xff]  ;;  %v117_v11 = vld [vmem:[%s383_s3 + $0x10] sm:$0xff] }
   0x4   :  { %253 = vmatpush3.msra.mxu0 %v31_v2  ;;  %263 = vmatprep.subr.mxu1 %v282_v0  ;;  %v28_v8 = vld [vmem:[%s384_s0] sm:$0xff]  ;;  %v116_v12 = vld [vmem:[%s383_s3 + $0x8] sm:$0xff] }
   0x5   :  { %254 = vmatprep.subr.mxu0 %v282_v0  ;;  %264 = vmatpush3.msra.mxu1 %v121_v5  ;;  %v119_v9 = vld [vmem:[%s383_s3 + $0x20] sm:$0xff] }
   0x6   :  { %255 = vmatpush3.msra.mxu0 %v30_v4  ;;  %265 = vmatprep.subr.mxu1 %v282_v0  ;;  %v115_v13 = vld [vmem:[%s383_s3] sm:$0xff] }
   0x7   :  { %256 = vmatprep.subr.mxu0 %v282_v0  ;;  %266 = vmatpush3.msra.mxu1 %v120_v6  ;;  %v230_v14 = vld [vmem:[%s385_s2] ss:$0 sm:$0xff] }
   0x8   :  { %257 = vmatpush3.msra.mxu0 %v29_v7  ;;  %267 = vmatprep.subr.mxu1 %v282_v0  ;;  %v232_v20 = vld [vmem:[%s387_s4] ss:$0 sm:$0xff] }
   0x9   :  { %259 = vmatmul.mubr.msk.f32.vlgmr.msra.gmra.mxu0 %vm40_vm1, %v28_v8  ;;  %268 = vmatpush3.msra.mxu1 %v119_v9  ;;  %v234_v24 = vld [vmem:[%s388_s5] ss:$0 sm:$0xff] }
   0xa   :  { %269 = vmatprep.subr.mxu1 %v282_v0  ;;  %277 = vmatprep.mubr.msk.f32.mxu1 %vm283_vm0, %v282_v0  ;;  %v235_v28 = vld [vmem:[#allocation2] ss:$0 sm:$0xff] }
   0xb   :  { %270 = vmatpush3.msra.mxu1 %v118_v10 }
   0xc   :  { %271 = vmatprep.subr.mxu1 %v282_v0 }
   0xd   :  { %272 = vmatpush3.msra.mxu1 %v117_v11 }
   0xe   :  { %273 = vmatprep.subr.mxu1 %v282_v0 }
   0xf   :  { %274 = vmatpush3.msra.mxu1 %v116_v12 }
  0x10   :  { %275 = vmatprep.subr.mxu1 %v282_v0 }
  0x11   :  { %276 = vmatpush3.msra.mxu1 %v115_v13 }
  0xc9   :  { %v110_v15 = vpop.f32.mrf.mxu0 }
  0xca   :  { %v111_v16 = vadd.f32 %v230_v14, %v110_v15 }
  0xcb   :  { %v260_v17 = vpop.f32.mrf.mxu0 }
  0xcc   :  { %v114_v18 = vmax.f32 %v111_v16, 0.0 }
  0xce   :  { %278 = vmatmul.mubr.msk.f32.vlgmr.msra.gmra.mxu1 %vm130_vm2, %v114_v18 }
 0x18e   :  { %v200_v21 = vpop.f32.mrf.mxu1 }
 0x18f   :  { %v201_v22 = vadd.f32 %v232_v20, %v200_v21 }
 0x190   :  { %v279_v23 = vpop.f32.mrf.mxu1 }
 0x191   :  { %v204_v25 = vmax.f32 %v201_v22, 0.0 }
 0x193   :  { %v212_v26 = vmul.f32 %v234_v24, %v204_v25 }
 0x195   :  { %v213_v27 = vsel %vm40_vm1, %v212_v26, 0.0 }
 0x196   :  { %214 = vadd.xlane.f32.xlu0 %v213_v27 }
 0x21f   :  { %v215_v29 = vpop.xlane.xlu0 %214 }
 0x220   :  { %v223_v30 = vadd.f32 %v235_v28, %v215_v29 }
 0x222   :  { %225 = vst.msk [vmem:[%s389_s7] sm:$0xff] %vm224_vm3, %v223_v30 }

</bundles_post_ra>
